<compile_context>
chip_gen: v6e
topology: v6e:2x2x1
jax: 0.10.0
libtpu: 0.0.40
codegen_flags: <defaults>
</compile_context>

<pallas_src>
import jax
import jax.numpy as jnp
from jax.experimental import pallas as pl
from jax.experimental.pallas import tpu as pltpu

_LANE = 128
_ROW_GRANULE = 32                # sublane multiple legal for f32/bf16/int8 packing
_TARGET_BLOCK_BYTES = 4 << 20    # ~4 MiB per block for big inputs (dtype-independent)
_MIN_BLOCK_BYTES = 1 << 20       # don't shrink blocks below this when splitting
_SINGLE_BLOCK_BYTES = 1 << 20    # slabs at/below this run as one full-extent block
_MIN_GRID_BLOCKS = 8             # target >= 8 grid steps (>= 4 per TC on v7x)
_VMEM_LIMIT_BYTES = 32 << 20


def _pact_kernel(alpha_ref, x_ref, o_ref):
    # alpha_ref: (1, 1) f32 scalar in SMEM; x_ref / o_ref: VMEM tiles.
    x = x_ref[...]
    alpha = alpha_ref[0, 0].astype(x.dtype)   # one scalar convert per step: noise
    zero = jnp.zeros((), dtype=x.dtype)
    o_ref[...] = jnp.minimum(jnp.maximum(x, zero), alpha)


def _choose_tile_rows(rows, itemsize):
    """Rows (of 128 lanes) per block, picked from a byte budget (dtype-aware)."""
    row_bytes = _LANE * itemsize
    slab_bytes = rows * row_bytes
    if slab_bytes <= _SINGLE_BLOCK_BYTES:
        return rows                              # single full-array block (always legal)
    tile = _TARGET_BLOCK_BYTES // row_bytes      # ~4 MiB per block regardless of dtype
    # Keep >= _MIN_GRID_BLOCKS grid steps (megacore sharding + DMA pipelining),
    # but never shrink a block below _MIN_BLOCK_BYTES (per-step overhead floor).
    tile = min(tile, max(pl.cdiv(rows, _MIN_GRID_BLOCKS),
                         _MIN_BLOCK_BYTES // row_bytes))
    # At least 2 blocks once we're past the single-block threshold (v7x: 2 TCs).
    tile = min(tile, pl.cdiv(rows, 2))
    # Round down to a sublane granule so the block is legal for all dtypes.
    tile = max((tile // _ROW_GRANULE) * _ROW_GRANULE, _ROW_GRANULE)
    return min(tile, rows)


def _pact_call(x_op, alpha_arr, block_shape, index_map, grid):
    n_elems = x_op.size
    nbytes = n_elems * jnp.dtype(x_op.dtype).itemsize
    return pl.pallas_call(
        _pact_kernel,
        out_shape=jax.ShapeDtypeStruct(x_op.shape, x_op.dtype),
        grid=grid,
        in_specs=[
            pl.BlockSpec(memory_space=pltpu.SMEM),        # alpha scalar
            pl.BlockSpec(block_shape, index_map),
        ],
        out_specs=pl.BlockSpec(block_shape, index_map),
        compiler_params=pltpu.CompilerParams(
            dimension_semantics=("parallel",),            # shards grid across TCs (v7x)
            vmem_limit_bytes=_VMEM_LIMIT_BYTES,           # clears v5e's 16 MiB default
        ),
        cost_estimate=pl.CostEstimate(
            flops=2 * n_elems,            # max + min per element
            transcendentals=0,
            bytes_accessed=2 * nbytes,    # read x, write out
        ),
    )(alpha_arr, x_op)


def _pact_2d(x2d, alpha_arr):
    """Kernel over a lane-dense (rows, 128) slab."""
    rows, lane = x2d.shape
    tile_rows = _choose_tile_rows(rows, jnp.dtype(x2d.dtype).itemsize)
    grid = (pl.cdiv(rows, tile_rows),)
    return _pact_call(x2d, alpha_arr, (tile_rows, lane), lambda i: (i, 0), grid)


def _pact_1d(x1d, alpha_arr):
    """Kernel over a flat 1-D array whose length is not a multiple of 128."""
    (n,) = x1d.shape
    itemsize = jnp.dtype(x1d.dtype).itemsize
    if n * itemsize <= _SINGLE_BLOCK_BYTES:
        tile = n                                  # full-extent block: always legal
    else:
        # 128-multiple blocks; the ragged last block is masked by Pallas.
        tile = _choose_tile_rows(pl.cdiv(n, _LANE), itemsize) * _LANE
    grid = (pl.cdiv(n, tile),)
    return _pact_call(x1d, alpha_arr, (tile,), lambda i: (i,), grid)


def pact_forward(x, alpha):
    """PACT forward: clamp(x, 0, alpha) for arbitrary-shape float x."""
    orig_shape = x.shape
    n = x.size
    if n == 0:
        return x

    alpha_arr = jnp.asarray(alpha, dtype=jnp.float32).reshape(1, 1)

    if n < _LANE:
        # Tiny input: not worth a kernel launch.
        return jnp.clip(x, 0.0, jnp.asarray(alpha).astype(x.dtype))

    x_flat = jnp.ravel(x)
    if n % _LANE == 0:
        # Lane-aligned: zero-copy reshape in, zero-copy reshape out.
        out2d = _pact_2d(x_flat.reshape(n // _LANE, _LANE), alpha_arr)
        return out2d.reshape(orig_shape)

    # Not lane-aligned: one 1-D pass over the whole flat array; no concatenate
    # and no second HBM pass for the tail.
    return _pact_1d(x_flat, alpha_arr).reshape(orig_shape)


if __name__ == "__main__":
    # Deterministic parameter init (matches nn.Parameter(torch.tensor(6.0))).
    alpha = jnp.float32(6.0)
    key = jax.random.PRNGKey(0)

    # Small NCHW input; scale so some values exceed alpha and some are negative.
    x = jax.random.normal(key, (2, 4, 16, 16), dtype=jnp.float32) * 5.0
    y = jax.block_until_ready(pact_forward(x, alpha))
    y_ref = jnp.clip(x, 0.0, alpha)
    assert y.shape == x.shape and y.dtype == x.dtype
    assert bool(jnp.allclose(y, y_ref)), "PACT kernel mismatch (aligned f32 path)"

    # Non-128-aligned element count -> 1-D masked path (no concatenate).
    x2 = jax.random.normal(jax.random.PRNGKey(1), (3, 5, 31), dtype=jnp.float32) * 5.0
    y2 = jax.block_until_ready(pact_forward(x2, alpha))
    assert bool(jnp.allclose(y2, jnp.clip(x2, 0.0, alpha))), "1-D tail path mismatch"

    # bf16 input -> dtype-scaled tiling path.
    x3 = (jax.random.normal(jax.random.PRNGKey(2), (4, 8, 32), dtype=jnp.float32) * 5.0
          ).astype(jnp.bfloat16)
    y3 = jax.block_until_ready(pact_forward(x3, alpha))
    assert y3.dtype == jnp.bfloat16
    assert bool(jnp.allclose(y3.astype(jnp.float32),
                             jnp.clip(x3.astype(jnp.float32), 0.0, 6.0))), "bf16 mismatch"

    # Medium slab (2 MiB f32) -> multi-block grid exercising the tile chooser.
    x4 = jax.random.normal(jax.random.PRNGKey(3), (8, 128, 512), dtype=jnp.float32) * 5.0
    y4 = jax.block_until_ready(pact_forward(x4, alpha))
    assert bool(jnp.allclose(y4, jnp.clip(x4, 0.0, alpha))), "multi-block path mismatch"

    # TODO(synk): backward pass (PACTFunction.backward straight-through grad_input
    # and grad_alpha = sum(grad * (x > alpha))) is not implemented; forward only.
    print("KERNEL_OK")
</pallas_src>

<mosaic_0001>
module attributes {stable_mosaic.version = 11 : i64} {
  func.func @_pact_kernel(%arg0: i32, %arg1: memref<1x1xf32, #tpu.memory_space<smem>>, %arg2: memref<16x128xf32, #tpu.memory_space<vmem>>, %arg3: memref<16x128xf32, #tpu.memory_space<vmem>>) attributes {dimension_semantics = [#tpu.dimension_semantics<parallel>], iteration_bounds = array<i64: 1>, scalar_prefetch = 0 : i64, scratch_operands = 0 : i64, tpu.core_type = #tpu.core_type<tc>, window_params = [{transform_indices = @transform_0, window_bounds = array<i64: 1, 1>}, {transform_indices = @transform_1, window_bounds = array<i64: 16, 128>}, {transform_indices = @transform_2, window_bounds = array<i64: 16, 128>}]} {
    %c0 = arith.constant 0 : index
    %c0_0 = arith.constant 0 : index
    %0 = vector.load %arg2[%c0, %c0_0] : memref<16x128xf32, #tpu.memory_space<vmem>>, vector<16x128xf32>
    %c0_1 = arith.constant 0 : index
    %c0_2 = arith.constant 0 : index
    %1 = memref.load %arg1[%c0_1, %c0_2] : memref<1x1xf32, #tpu.memory_space<smem>>
    %cst = arith.constant 0.000000e+00 : f32
    %2 = vector.broadcast %cst : f32 to vector<16x128xf32>
    %3 = arith.maximumf %0, %2 : vector<16x128xf32>
    %4 = vector.broadcast %1 : f32 to vector<16x128xf32>
    %5 = arith.minimumf %3, %4 : vector<16x128xf32>
    %c0_3 = arith.constant 0 : index
    %c0_4 = arith.constant 0 : index
    %6 = vector.load %arg3[%c0_3, %c0_4] : memref<16x128xf32, #tpu.memory_space<vmem>>, vector<16x128xf32>
    tpu.vector_store %arg3[%c0_3, %c0_4], %5 {strides = array<i32>} : memref<16x128xf32, #tpu.memory_space<vmem>>, vector<16x128xf32>,
    return
  }
  func.func @transform_0(%arg0: i32) -> (i32, i32) {
    %c0_i32 = arith.constant 0 : i32
    %c0_i32_0 = arith.constant 0 : i32
    %c0_i32_1 = arith.constant 0 : i32
    return %c0_i32, %c0_i32_0 : i32, i32
  }
  func.func @transform_1(%arg0: i32) -> (i32, i32) {
    %c0_i32 = arith.constant 0 : i32
    %c0_i32_0 = arith.constant 0 : i32
    return %arg0, %c0_i32 : i32, i32
  }
  func.func @transform_2(%arg0: i32) -> (i32, i32) {
    %c0_i32 = arith.constant 0 : i32
    %c0_i32_0 = arith.constant 0 : i32
    return %arg0, %c0_i32 : i32, i32
  }
}

</mosaic_0001>

<bundles_post_ra>
// kernel: tpu_custom_call.1
= control target key start
LH: loop header
LB: loop body
LE: loop exit
PB: predicated region body
PF: predicated region fallthrough
CT: control target
= control target key end

     0   :  { %8 = vsyncpa [#allocation4], 0  ;;  %s130_s0 = inlined_call_operand.<no memory space> [shape: f32[1,1], index: 0, kind: input, shape index: {}]   ;;  %s131_s1 = inlined_call_operand.hbm [shape: f32[16,128], index: 1, kind: input, shape index: {}]   ;;  %s132_s2 = inlined_call_operand.hbm [shape: f32[16,128], index: 2, kind: output, shape index: {}]  }
   0x1   :  { %9 = vsyncpa [#allocation5], 0  ;;  %s102_s9 = smov [#allocation3]  }
   0x2   :  { %s17_s10 = sshll.u32 %s102_s9, 4  ;;  %s18_s10 = int_to_ptr.vmem [resolvable:$true] %s17_s10 }
   0x3   :  { %s66_s11 = scalar_lea.vmem %s18_s10, 256  ;;  %p71_p1 = scmp.lt.s32.totalorder %s18_s10, %s18_s10 }
   0x4   :  { %p67_p0 = scmp.ne.s32.totalorder %s18_s10, %s66_s11  ;;  %p72_p2 = scmp.lt.s32.totalorder %s66_s11, %s66_s11 }
   0x6   :  { %p73_p3 = por %p72_p2, %p71_p1 }
   0x8   :  { %p74_p4 = pnand %p73_p3, %p67_p0 }
   0xa   :  { %77 = shalt.err (!%p74_p4)
}
   0xb   :  { %s103_s12 = smov 128   ;;  %s104_s13 = smov 8  }
   0xc   :  { %23 = dma.hbm_to_vmem [thread:$0]  %s131_s1, 256, %s18_s10, [#allocation4], %s103_s12, %s103_s12, %s104_s13  }
   0xd   :  { %98 = dma.done.wait [#allocation4], 256  }
   0xe   :  { %99 = vsyncadd [#allocation4], 4294967040  ;;  %v27_v0 = vld [vmem:[#allocation3] sm:$0xff]  ;;  %v32_v1 = vstv %s130_s0  ;;  %v28_v2 = vld [vmem:[#allocation3 + $0x8] sm:$0xff]  ;;  %s105_s18 = smov [#allocation6]  }
   0xf   :  { %s42_s19 = sshll.u32 %s105_s18, 4  ;;  %v30_v3 = vmax.f32 %v27_v0, 0.0  ;;  %v31_v4 = vmax.f32 %v28_v2, 0.0  ;;  %s43_s19 = int_to_ptr.vmem [resolvable:$true] %s42_s19 }
  0x10   :  { %s78_s20 = scalar_lea.vmem %s43_s19, 256  ;;  %p83_p6 = scmp.lt.s32.totalorder %s43_s19, %s43_s19 }
  0x11   :  { %v33_v5 = vmin.f32 %v30_v3, %v32_v1  ;;  %v34_v6 = vmin.f32 %v31_v4, %v32_v1  ;;  %p79_p5 = scmp.ne.s32.totalorder %s43_s19, %s78_s20  ;;  %p84_p7 = scmp.lt.s32.totalorder %s78_s20, %s78_s20 }
  0x13   :  { %35 = vst [vmem:[#allocation6] sm:$0xff] %v33_v5  ;;  %36 = vst [vmem:[#allocation6 + $0x8] sm:$0xff] %v34_v6  ;;  %p85_p8 = por %p84_p7, %p83_p6 }
  0x15   :  { %p86_p9 = pnand %p85_p8, %p79_p5 }
  0x17   :  { %89 = shalt.err (!%p86_p9)
}
  0x18   :  { %48 = dma.vmem_to_hbm [thread:$0]  %s43_s19, 256, %s132_s2, [#allocation5], %s103_s12, %s103_s12, %s104_s13  }
  0x19   :  { %100 = dma.done.wait [#allocation5], 256  }
  0x1a   :  { %101 = vsyncadd [#allocation5], 4294967040 }
  0x1b   :  { %52 = vsyncpa [#allocation4], 1 }
  0x1c   :  { %53 = vsyncpa [#allocation5], 1 }

</bundles_post_ra>
